<compile_context>
chip_gen: v5e
topology: v5e:2x2
jax: 0.10.0
libtpu: 0.0.40
codegen_flags: <defaults>
</compile_context>

<pallas_src>
import math
import functools

import jax
import jax.numpy as jnp
from jax.experimental import pallas as pl
from jax.experimental.pallas import tpu as pltpu

HEADS = 8
DROP = 0.11847993503770292  # attn dropout prob; identity at inference (see note above)


# ------------------------------- kernel helpers ----------------------------------- #

def _matT(x, w):
    """x @ w.T with torch (out, in) weight layout; bf16 operands, f32 accumulate."""
    return jax.lax.dot_general(x, w, (((1,), (1,)), ((), ())),
                               preferred_element_type=jnp.float32)


def _fused_kernel_s1(x1_ref, x2_ref, wz1_ref, bz1_ref, wz2_ref, bz2_ref,
                     z1_ref, z2_ref):
    """S == 1 specialization: attention == V, everything folded into one GEMM/stream."""
    x1 = x1_ref[...].astype(jnp.bfloat16)          # (rows, D)
    x2 = x2_ref[...].astype(jnp.bfloat16)
    z1_ref[...] = (_matT(x2, wz1_ref[...]) + bz1_ref[...]).astype(z1_ref.dtype)
    z2_ref[...] = (_matT(x1, wz2_ref[...]) + bz2_ref[...]).astype(z2_ref.dtype)


def _fused_kernel(x1_ref, x2_ref, wx1_ref, bx1_ref, wx2_ref, bx2_ref,
                  wo_ref, bo_ref, z1_ref, z2_ref, *, Bb, S, D, H):
    """General S: fused QKV projections + dual-stream attention + shared out_proj."""
    dh = D // H
    rows = Bb * S
    scale = 1.0 / math.sqrt(dh)
    bf16 = jnp.bfloat16

    x1 = x1_ref[...].astype(bf16)                  # (rows, D)
    x2 = x2_ref[...].astype(bf16)

    # One stacked matmul per input covers both streams' Q/K/V (projections folded
    # host-side into in_proj).  Columns: wx1 -> [Q_s1 | K_s2 | V_s2], wx2 -> [Q_s2 | K_s1 | V_s1].
    qkv1 = _matT(x1, wx1_ref[...]) + bx1_ref[...]  # (rows, 3D)
    qkv2 = _matT(x2, wx2_ref[...]) + bx2_ref[...]  # (rows, 3D)

    # Stack the two streams along the attention batch axis (they share attn weights).
    def stack(a, b):
        return jnp.concatenate([a, b], axis=0).reshape(2 * Bb, S, D).astype(bf16)

    q = stack(qkv1[:, 0:D],          qkv2[:, 0:D])
    k = stack(qkv2[:, D:2 * D],      qkv1[:, D:2 * D])
    v = stack(qkv2[:, 2 * D:3 * D],  qkv1[:, 2 * D:3 * D])

    # TODO(synk): flash-style K-tiled online softmax + head-to-batch relayout for
    # long sequences; at the shipped S=1 shape this path is not taken at all.
    outs = []
    for h in range(H):
        lo = h * dh
        qh = q[:, :, lo:lo + dh]
        kh = k[:, :, lo:lo + dh]
        vh = v[:, :, lo:lo + dh]
        s = jnp.einsum('bqd,bkd->bqk', qh, kh,
                       preferred_element_type=jnp.float32) * scale   # (2Bb, S, S) f32
        m = jnp.max(s, axis=-1, keepdims=True)
        p = jnp.exp(s - m)
        l = jnp.sum(p, axis=-1, keepdims=True)
        oh = jnp.einsum('bqk,bkd->bqd', p.astype(bf16), vh,
                        preferred_element_type=jnp.float32)
        outs.append(oh * pl.reciprocal(l, approx=True))               # EUP reciprocal

    o = jnp.concatenate(outs, axis=-1).reshape(2 * rows, D).astype(bf16)
    z = _matT(o, wo_ref[...]) + bo_ref[...]                           # (2*rows, D) f32
    z1_ref[...] = z[0:rows, :].astype(z1_ref.dtype)
    z2_ref[...] = z[rows:2 * rows, :].astype(z2_ref.dtype)


# ------------------------------ host-side folding --------------------------------- #

def fold_params(params):
    """Fold the per-stream q/kv projections into MultiheadAttention's in_proj.

    (x @ Wi^T + bi) @ Wo^T + bo == x @ (Wo @ Wi)^T + (Wo @ bi + bo)
    """
    D = params["q1_w"].shape[0]
    wq, wk, wv = jnp.split(params["in_proj_w"], 3, axis=0)
    bq, bk, bv = jnp.split(params["in_proj_b"], 3, axis=0)

    def comp(w_outer, b_outer, w_inner, b_inner):
        return w_outer @ w_inner, w_outer @ b_inner + b_outer

    # stream 1: Z1 = attn(q1(p1), kv2(p2));  stream 2: Z2 = attn(q2(p2), kv1(p1))
    q1w, q1b = comp(wq, bq, params["q1_w"], params["q1_b"])
    q2w, q2b = comp(wq, bq, params["q2_w"], params["q2_b"])
    k1w, k1b = comp(wk, bk, params["kv2_w"][:D], params["kv2_b"][:D])
    v1w, v1b = comp(wv, bv, params["kv2_w"][D:], params["kv2_b"][D:])
    k2w, k2b = comp(wk, bk, params["kv1_w"][:D], params["kv1_b"][:D])
    v2w, v2b = comp(wv, bv, params["kv1_w"][D:], params["kv1_b"][D:])

    # Weights consuming x1 = p1 rows: [Q_s1 ; K_s2 ; V_s2]; x2 = p2 rows: [Q_s2 ; K_s1 ; V_s1]
    return dict(
        wx1=jnp.concatenate([q1w, k2w, v2w], axis=0),
        bx1=jnp.concatenate([q1b, k2b, v2b], axis=0),
        wx2=jnp.concatenate([q2w, k1w, v1w], axis=0),
        bx2=jnp.concatenate([q2b, k1b, v1b], axis=0),
        out_w=params["out_w"], out_b=params["out_b"])


def _choose_block_b(B, S):
    """Rows per grid step = Bb*S: sublane-aligned, Bb | B, grid >= 2 when possible."""
    target_rows = 512
    candidates = [bb for bb in range(1, B + 1)
                  if B % bb == 0 and (bb * S) % 8 == 0]
    if not candidates:
        return B                       # whole batch in one step (block == full array)
    good = [bb for bb in candidates if bb * S <= target_rows]
    bb = max(good) if good else min(candidates)
    if bb == B and B > 1:
        for c in sorted(candidates, reverse=True):
            if c < B and c * S <= target_rows:
                return c               # split work across v7x's two TensorCores
    return bb


# ----------------------------------- wrapper --------------------------------------- #

def seq_cofusion_forward(params, p1, p2):
    """Fused inference forward of SeqCoFusionBlock.  p1, p2: (B, S, D) float32."""
    B, S, D = p1.shape
    H = HEADS
    assert D % 128 == 0 and D % H == 0, "dim must be a multiple of 128 and of HEADS"
    dh = D // H

    fused = fold_params(params)
    Bb = _choose_block_b(B, S)
    Rb = Bb * S
    grid = (B // Bb,)
    bf16 = jnp.bfloat16

    x1 = p1.reshape(B * S, D)
    x2 = p2.reshape(B * S, D)

    row_spec = pl.BlockSpec((Rb, D), lambda i: (i, 0))

    def const_spec(shape):                        # VMEM-resident, block idx never moves
        return pl.BlockSpec(shape, lambda i: (0, 0))

    cparams = pltpu.CompilerParams(dimension_semantics=("parallel",),
                                   vmem_limit_bytes=64 * 1024 * 1024)

    if S == 1:
        # softmax over a single key == 1 -> attention output == V; fold out_proj too.
        wz1 = (fused["out_w"] @ fused["wx2"][2 * D:]).astype(bf16)           # Z1 <- x2
        bz1 = (fused["out_w"] @ fused["bx2"][2 * D:] + fused["out_b"]).reshape(1, D)
        wz2 = (fused["out_w"] @ fused["wx1"][2 * D:]).astype(bf16)           # Z2 <- x1
        bz2 = (fused["out_w"] @ fused["bx1"][2 * D:] + fused["out_b"]).reshape(1, D)

        cost = pl.CostEstimate(flops=4 * B * D * D, transcendentals=0,
                               bytes_accessed=4 * B * D * 4 + 2 * D * D * 2 + 2 * D * 4)
        z1, z2 = pl.pallas_call(
            _fused_kernel_s1,
            out_shape=(jax.ShapeDtypeStruct((B * S, D), p1.dtype),) * 2,
            grid=grid,
            in_specs=[row_spec, row_spec,
                      const_spec((D, D)), const_spec((1, D)),
                      const_spec((D, D)), const_spec((1, D))],
            out_specs=(row_spec, row_spec),
            compiler_params=cparams,
            cost_estimate=cost,
        )(x1, x2, wz1, bz1, wz2, bz2)
    else:
        wx1 = fused["wx1"].astype(bf16)
        wx2 = fused["wx2"].astype(bf16)
        wo = fused["out_w"].astype(bf16)
        bx1 = fused["bx1"].reshape(1, 3 * D)
        bx2 = fused["bx2"].reshape(1, 3 * D)
        bo = fused["out_b"].reshape(1, D)

        flops = (12 * B * S * D * D          # fused QKV projections (both inputs)
                 + 8 * B * H * S * S * dh    # QK^T and PV, both streams
                 + 4 * B * S * D * D)        # out_proj, both streams
        cost = pl.CostEstimate(
            flops=flops, transcendentals=2 * B * H * S * S,
            bytes_accessed=(4 * B * S * D * 4 + (6 * D * D + D * D) * 2
                            + (6 * D + D) * 4))
        kern = functools.partial(_fused_kernel, Bb=Bb, S=S, D=D, H=H)
        z1, z2 = pl.pallas_call(
            kern,
            out_shape=(jax.ShapeDtypeStruct((B * S, D), p1.dtype),) * 2,
            grid=grid,
            in_specs=[row_spec, row_spec,
                      const_spec((3 * D, D)), const_spec((1, 3 * D)),
                      const_spec((3 * D, D)), const_spec((1, 3 * D)),
                      const_spec((D, D)), const_spec((1, D))],
            out_specs=(row_spec, row_spec),
            compiler_params=cparams,
            cost_estimate=cost,
        )(x1, x2, wx1, bx1, wx2, bx2, wo, bo)

    z1 = z1.reshape(B, S, D)
    z2 = z2.reshape(B, S, D)
    if S == 1:                                    # torch .squeeze(1)
        z1 = z1.reshape(B, D)
        z2 = z2.reshape(B, D)
    return z1, z2


# ----------------------------- params + reference --------------------------------- #

def init_params(key, dim):
    ks = jax.random.split(key, 6)

    def lin(k, dout, din):
        bound = 1.0 / math.sqrt(din)
        kw, kb = jax.random.split(k)
        w = jax.random.uniform(kw, (dout, din), jnp.float32, -bound, bound)
        b = jax.random.uniform(kb, (dout,), jnp.float32, -bound, bound)
        return w, b

    q1_w, q1_b = lin(ks[0], dim, dim)
    kv1_w, kv1_b = lin(ks[1], 2 * dim, dim)
    q2_w, q2_b = lin(ks[2], dim, dim)
    kv2_w, kv2_b = lin(ks[3], 2 * dim, dim)
    in_w, in_b = lin(ks[4], 3 * dim, dim)        # nn.MultiheadAttention in_proj
    out_w, out_b = lin(ks[5], dim, dim)          # nn.MultiheadAttention out_proj
    return dict(q1_w=q1_w, q1_b=q1_b, kv1_w=kv1_w, kv1_b=kv1_b,
                q2_w=q2_w, q2_b=q2_b, kv2_w=kv2_w, kv2_b=kv2_b,
                in_proj_w=in_w, in_proj_b=in_b, out_w=out_w, out_b=out_b)


def reference_forward(params, p1, p2):
    """Pure-JAX f32 reference of the PyTorch forward (eval mode)."""
    B, S, D = p1.shape
    H = HEADS
    dh = D // H

    def lin(x, w, b):
        return x @ w.T + b

    def mha(q_in, k_in, v_in):
        wq, wk, wv = jnp.split(params["in_proj_w"], 3, axis=0)
        bq, bk, bv = jnp.split(params["in_proj_b"], 3, axis=0)
        Q = lin(q_in, wq, bq).reshape(B, S, H, dh).transpose(0, 2, 1, 3)
        K = lin(k_in, wk, bk).reshape(B, S, H, dh).transpose(0, 2, 1, 3)
        V = lin(v_in, wv, bv).reshape(B, S, H, dh).transpose(0, 2, 1, 3)
        s = jnp.einsum("bhqd,bhkd->bhqk", Q, K) / math.sqrt(dh)
        p = jax.nn.softmax(s, axis=-1)
        O = jnp.einsum("bhqk,bhkd->bhqd", p, V).transpose(0, 2, 1, 3).reshape(B * S, D)
        return lin(O, params["out_w"], params["out_b"])

    x1 = p1.reshape(B * S, D)
    x2 = p2.reshape(B * S, D)
    a1 = lin(x1, params["q1_w"], params["q1_b"])
    a2 = lin(x2, params["q2_w"], params["q2_b"])
    kv1 = lin(x1, params["kv1_w"], params["kv1_b"])
    kv2 = lin(x2, params["kv2_w"], params["kv2_b"])
    Z1 = mha(a1, kv2[:, :D], kv2[:, D:]).reshape(B, S, D)
    Z2 = mha(a2, kv1[:, :D], kv1[:, D:]).reshape(B, S, D)
    if S == 1:
        Z1 = Z1.reshape(B, D)
        Z2 = Z2.reshape(B, D)
    return Z1, Z2


# ----------------------------------- main ----------------------------------------- #

if __name__ == "__main__":
    import numpy as np

    D = 128                  # multiple of 128 and of HEADS=8 -> head_dim = 16
    key = jax.random.PRNGKey(0)
    kp, k1, k2, k3, k4 = jax.random.split(key, 5)
    params = init_params(kp, D)

    fwd = jax.jit(seq_cofusion_forward)

    # Case 1: the module's intended shape (seq len 1 -> .squeeze(1) applies).
    B1, S1 = 16, 1
    p1 = jax.random.normal(k1, (B1, S1, D), jnp.float32)
    p2 = jax.random.normal(k2, (B1, S1, D), jnp.float32)
    z1, z2 = fwd(params, p1, p2)
    jax.block_until_ready((z1, z2))
    r1, r2 = reference_forward(params, p1, p2)
    assert z1.shape == (B1, D) and z2.shape == (B1, D)
    np.testing.assert_allclose(np.asarray(z1), np.asarray(r1), rtol=5e-2, atol=3e-2)
    np.testing.assert_allclose(np.asarray(z2), np.asarray(r2), rtol=5e-2, atol=3e-2)

    # Case 2: S > 1 exercises the full attention path (no squeeze).
    B2, S2 = 4, 8
    p1 = jax.random.normal(k3, (B2, S2, D), jnp.float32)
    p2 = jax.random.normal(k4, (B2, S2, D), jnp.float32)
    z1, z2 = fwd(params, p1, p2)
    jax.block_until_ready((z1, z2))
    r1, r2 = reference_forward(params, p1, p2)
    assert z1.shape == (B2, S2, D) and z2.shape == (B2, S2, D)
    np.testing.assert_allclose(np.asarray(z1), np.asarray(r1), rtol=5e-2, atol=3e-2)
    np.testing.assert_allclose(np.asarray(z2), np.asarray(r2), rtol=5e-2, atol=3e-2)

    print("KERNEL_OK")
</pallas_src>

<mosaic_0001>
module attributes {stable_mosaic.version = 11 : i64} {
  func.func @_fused_kernel_s1(%arg0: i32, %arg1: memref<8x128xf32, #tpu.memory_space<vmem>>, %arg2: memref<8x128xf32, #tpu.memory_space<vmem>>, %arg3: memref<128x128xbf16, #tpu.memory_space<vmem>>, %arg4: memref<1x128xf32, #tpu.memory_space<vmem>>, %arg5: memref<128x128xbf16, #tpu.memory_space<vmem>>, %arg6: memref<1x128xf32, #tpu.memory_space<vmem>>, %arg7: memref<8x128xf32, #tpu.memory_space<vmem>>, %arg8: memref<8x128xf32, #tpu.memory_space<vmem>>) attributes {dimension_semantics = [#tpu.dimension_semantics<parallel>], iteration_bounds = array<i64: 2>, scalar_prefetch = 0 : i64, scratch_operands = 0 : i64, tpu.core_type = #tpu.core_type<tc>, window_params = [{transform_indices = @transform_0, window_bounds = array<i64: 8, 128>}, {transform_indices = @transform_1, window_bounds = array<i64: 8, 128>}, {pipeline_mode = #tpu.pipeline_mode<synchronous>, transform_indices = @transform_2, window_bounds = array<i64: 128, 128>}, {pipeline_mode = #tpu.pipeline_mode<synchronous>, transform_indices = @transform_3, window_bounds = array<i64: 1, 128>}, {pipeline_mode = #tpu.pipeline_mode<synchronous>, transform_indices = @transform_4, window_bounds = array<i64: 128, 128>}, {pipeline_mode = #tpu.pipeline_mode<synchronous>, transform_indices = @transform_5, window_bounds = array<i64: 1, 128>}, {transform_indices = @transform_6, window_bounds = array<i64: 8, 128>}, {transform_indices = @transform_7, window_bounds = array<i64: 8, 128>}]} {
    %c0 = arith.constant 0 : index
    %c0_0 = arith.constant 0 : index
    %0 = vector.load %arg1[%c0, %c0_0] : memref<8x128xf32, #tpu.memory_space<vmem>>, vector<8x128xf32>
    %1 = arith.truncf %0 : vector<8x128xf32> to vector<8x128xbf16>
    %c0_1 = arith.constant 0 : index
    %c0_2 = arith.constant 0 : index
    %2 = vector.load %arg2[%c0_1, %c0_2] : memref<8x128xf32, #tpu.memory_space<vmem>>, vector<8x128xf32>
    %3 = arith.truncf %2 : vector<8x128xf32> to vector<8x128xbf16>
    %c0_3 = arith.constant 0 : index
    %c0_4 = arith.constant 0 : index
    %4 = vector.load %arg3[%c0_3, %c0_4] : memref<128x128xbf16, #tpu.memory_space<vmem>>, vector<128x128xbf16>
    %cst = arith.constant dense<0.000000e+00> : vector<8x128xf32>
    %5 = tpu.matmul %3, %4, %cst {dimension_numbers = #tpu.dot_dimension_numbers<[1], [1], [0], [0], [0, 0, 1, 0], [], []>} : vector<8x128xbf16>, vector<128x128xbf16>, vector<8x128xf32> -> vector<8x128xf32>
    %c0_5 = arith.constant 0 : index
    %c0_6 = arith.constant 0 : index
    %6 = vector.load %arg4[%c0_5, %c0_6] : memref<1x128xf32, #tpu.memory_space<vmem>>, vector<1x128xf32>
    %7 = vector.broadcast %6 : vector<1x128xf32> to vector<8x128xf32>
    %8 = arith.addf %5, %7 : vector<8x128xf32>
    %c0_7 = arith.constant 0 : index
    %c0_8 = arith.constant 0 : index
    %9 = vector.load %arg7[%c0_7, %c0_8] : memref<8x128xf32, #tpu.memory_space<vmem>>, vector<8x128xf32>
    tpu.vector_store %arg7[%c0_7, %c0_8], %8 {strides = array<i32>} : memref<8x128xf32, #tpu.memory_space<vmem>>, vector<8x128xf32>,
    %c0_9 = arith.constant 0 : index
    %c0_10 = arith.constant 0 : index
    %10 = vector.load %arg5[%c0_9, %c0_10] : memref<128x128xbf16, #tpu.memory_space<vmem>>, vector<128x128xbf16>
    %cst_11 = arith.constant dense<0.000000e+00> : vector<8x128xf32>
    %11 = tpu.matmul %1, %10, %cst_11 {dimension_numbers = #tpu.dot_dimension_numbers<[1], [1], [0], [0], [0, 0, 1, 0], [], []>} : vector<8x128xbf16>, vector<128x128xbf16>, vector<8x128xf32> -> vector<8x128xf32>
    %c0_12 = arith.constant 0 : index
    %c0_13 = arith.constant 0 : index
    %12 = vector.load %arg6[%c0_12, %c0_13] : memref<1x128xf32, #tpu.memory_space<vmem>>, vector<1x128xf32>
    %13 = vector.broadcast %12 : vector<1x128xf32> to vector<8x128xf32>
    %14 = arith.addf %11, %13 : vector<8x128xf32>
    %c0_14 = arith.constant 0 : index
    %c0_15 = arith.constant 0 : index
    %15 = vector.load %arg8[%c0_14, %c0_15] : memref<8x128xf32, #tpu.memory_space<vmem>>, vector<8x128xf32>
    tpu.vector_store %arg8[%c0_14, %c0_15], %14 {strides = array<i32>} : memref<8x128xf32, #tpu.memory_space<vmem>>, vector<8x128xf32>,
    return
  }
  func.func @transform_0(%arg0: i32) -> (i32, i32) {
    %c0_i32 = arith.constant 0 : i32
    %c0_i32_0 = arith.constant 0 : i32
    return %arg0, %c0_i32 : i32, i32
  }
  func.func @transform_1(%arg0: i32) -> (i32, i32) {
    %c0_i32 = arith.constant 0 : i32
    %c0_i32_0 = arith.constant 0 : i32
    return %arg0, %c0_i32 : i32, i32
  }
  func.func @transform_2(%arg0: i32) -> (i32, i32) {
    %c0_i32 = arith.constant 0 : i32
    %c0_i32_0 = arith.constant 0 : i32
    %c0_i32_1 = arith.constant 0 : i32
    return %c0_i32, %c0_i32_0 : i32, i32
  }
  func.func @transform_3(%arg0: i32) -> (i32, i32) {
    %c0_i32 = arith.constant 0 : i32
    %c0_i32_0 = arith.constant 0 : i32
    %c0_i32_1 = arith.constant 0 : i32
    return %c0_i32, %c0_i32_0 : i32, i32
  }
  func.func @transform_4(%arg0: i32) -> (i32, i32) {
    %c0_i32 = arith.constant 0 : i32
    %c0_i32_0 = arith.constant 0 : i32
    %c0_i32_1 = arith.constant 0 : i32
    return %c0_i32, %c0_i32_0 : i32, i32
  }
  func.func @transform_5(%arg0: i32) -> (i32, i32) {
    %c0_i32 = arith.constant 0 : i32
    %c0_i32_0 = arith.constant 0 : i32
    %c0_i32_1 = arith.constant 0 : i32
    return %c0_i32, %c0_i32_0 : i32, i32
  }
  func.func @transform_6(%arg0: i32) -> (i32, i32) {
    %c0_i32 = arith.constant 0 : i32
    %c0_i32_0 = arith.constant 0 : i32
    return %arg0, %c0_i32 : i32, i32
  }
  func.func @transform_7(%arg0: i32) -> (i32, i32) {
    %c0_i32 = arith.constant 0 : i32
    %c0_i32_0 = arith.constant 0 : i32
    return %arg0, %c0_i32 : i32, i32
  }
}

</mosaic_0001>

<bundles_post_ra>
// kernel: seq_cofusion_forward.1
= control target key start
LH: loop header
LB: loop body
LE: loop exit
PB: predicated region body
PF: predicated region fallthrough
CT: control target
= control target key end

     0   :  { %s1052_s0 = inlined_call_operand.vmem [shape: f32[16,128], index: 0, kind: input, shape index: {}]   ;;  %s1053_s1 = inlined_call_operand.vmem [shape: f32[16,128], index: 1, kind: input, shape index: {}]   ;;  %s1054_s2 = inlined_call_operand.vmem [shape: bf16[128,128], index: 2, kind: input, shape index: {}]   ;;  %s1055_s3 = inlined_call_operand.vmem [shape: f32[1,128], index: 3, kind: input, shape index: {}]   ;;  %s1056_s4 = inlined_call_operand.vmem [shape: bf16[128,128], index: 4, kind: input, shape index: {}]   ;;  %s1057_s5 = inlined_call_operand.vmem [shape: f32[1,128], index: 5, kind: input, shape index: {}]   ;;  %s1058_s6 = inlined_call_operand.hbm [shape: f32[16,128], index: 6, kind: output, shape index: {0}]   ;;  %s1059_s7 = inlined_call_operand.hbm [shape: f32[16,128], index: 7, kind: output, shape index: {1}]  }
   0x1   :  { %1060 = sst [smem:[#allocation8_spill]] %s1052_s0 }
   0x2   :  { %1061 = sst [smem:[#allocation9_spill]] %s1053_s1 }
   0x3   :  { %1062 = sst [smem:[#allocation10_spill]] %s1054_s2 }
   0x4   :  { %13 = vsyncpa [#allocation3], 0 }
   0x5   :  { %15 = vsyncpa [#allocation3 + $0x1], 0 }
   0x6   :  { %16 = vsyncpa [#allocation5], 0 }
   0x7   :  { %18 = vsyncpa [#allocation5 + $0x1], 0  ;;  %s885_s24 = smov 0   ;;  %s887_s25 = smov 0  }
   0x8   :  { %s889_s26 = smov 0   ;;  %s891_s27 = smov 0  }
   0x9 LB: > { %s906_s28 = sadd.s32 4294967295, %s843_s27   ;;  %s609_s29 = sadd.s32 4294967294, %s843_s27   ;;  %s843_s27 = sphi %s891_s27, %s1071_s27   ;;  %s839_s26 = sphi %s889_s26, %s1070_s26   ;;  %s835_s25 = sphi %s887_s25, %s1069_s25   ;;  %s831_s24 = sphi %s885_s24, %s1068_s24  }
   0xa   : > { %s910_s30 = sadd.s32 1, %s843_s27   ;;  %s167_s8 = sadd.s32 1, %s839_s26 }
   0xb   : > { %s164_s9 = ssub.s32 %s843_s27, %s910_s30  ;;  %p177_p0 = scmp.ne.s32.totalorder %s839_s26, %s835_s25 }
   0xc   : > { %p165_p1 = scmp.eq.s32.totalorder %s164_s9, 0  ;;  %p178_p2 = scmp.eq.s32.totalorder %s906_s28, 1 }
   0xd   : > { %p183_p3 = scmp.ne.s32.totalorder %s835_s25, %s831_s24  ;;  %p184_p4 = scmp.eq.s32.totalorder %s609_s29, 1 }
   0xe   : > { %s921_s10 = scalar_select %p165_p1, %s839_s26, %s167_s8  }
   0xf   : > { %p923_p5 = por %p178_p2, %p177_p0  ;;  %p927_p6 = por %p184_p4, %p183_p3 }
  0x10   : > { %p612_p7 = scmp.ge.s32.totalorder %s843_s27, 1  ;;  %p254_p8 = scmp.lt.s32.totalorder %s843_s27, 3 }
  0x12   : > { %p255_p9 = pnand %p612_p7, %p254_p8 }
  0x13   : > { %s1065_s2 = sld [smem:[#allocation10_spill]] (!%p255_p9)  ;;  %p294_p10 = scmp.lt.s32.totalorder (!%p255_p9), %s906_s28, 1 }
  0x14   : > { %258 = sbr.rel (%p255_p9) target bundleno = 233 (0xe9), region = 44  ;;  %s1066_s1 = sld [smem:[#allocation9_spill]] (!%p255_p9) }
  0x15   : > { %s1067_s0 = sld [smem:[#allocation8_spill]] (!%p255_p9)  ;;  %s990_s8 = sand.u32 (!%p255_p9), 1, %s835_s25  }
  0x16   : > { %s683_s9 = sshll.u32 (!%p255_p9), %s906_s28, 3  ;;  %s769_s19 = scalar_lea.hbm (!%p255_p9), %s1058_s6, 16 }
  0x17   : > { %s486_s17 = scalar_lea.hbm (!%p255_p9), %s1058_s6, %s683_s9 }
  0x19   : > { %v694_v0 = vld [vmem:[%s1065_s2 + $0x38] sm:$0xff]  ;;  %v693_v2 = vld [vmem:[%s1065_s2 + $0x30] sm:$0xff]  ;;  %v692_v4 = vld [vmem:[%s1065_s2 + $0x28] sm:$0xff]  ;;  %s295_s13 = scalar_select %p294_p10, %s906_s28, 1 }
  0x1a   : > { %v702_v1 = vld [vmem:[%s1056_s4 + $0x38] sm:$0xff]  ;;  %374 = vmatpush.bf16.xpose.msra.mxu0 %v694_v0  ;;  %v701_v3 = vld [vmem:[%s1056_s4 + $0x30] sm:$0xff]  ;;  %v700_v5 = vld [vmem:[%s1056_s4 + $0x28] sm:$0xff] }
  0x1b   : > { %456 = vmatpush.bf16.xpose.msra.mxu1 %v702_v1  ;;  %v691_v6 = vld [vmem:[%s1065_s2 + $0x20] sm:$0xff]  ;;  %v690_v8 = vld [vmem:[%s1065_s2 + $0x18] sm:$0xff]  ;;  %v689_v10 = vld [vmem:[%s1065_s2 + $0x10] sm:$0xff]  ;;  %s615_s14 = sshll.u32 %s295_s13, 3  ;;  %s613_s13 = sshll.u32 %s990_s8, 3 }
  0x1c   : > { %v699_v7 = vld [vmem:[%s1056_s4 + $0x20] sm:$0xff]  ;;  %v698_v9 = vld [vmem:[%s1056_s4 + $0x18] sm:$0xff]  ;;  %v697_v11 = vld [vmem:[%s1056_s4 + $0x10] sm:$0xff]  ;;  %s301_s21 = scalar_lea.vmem %s1066_s1, %s615_s14  ;;  %s297_s29 = scalar_lea.vmem %s1067_s0, %s615_s14 }
  0x1d   : > { %v688_v12 = vld [vmem:[%s1065_s2 + $0x8] sm:$0xff]  ;;  %v687_v14 = vld [vmem:[%s1065_s2] sm:$0xff]  ;;  %s500_s14 = scalar_lea.hbm %s1059_s7, %s683_s9  ;;  %s490_s0 = sshll.u32 %s486_s17, 4  ;;  %s491_s0 = int_to_ptr.hbm [resolvable:$true] %s490_s0 }
  0x1e   : > { %v696_v13 = vld [vmem:[%s1056_s4 + $0x8] sm:$0xff]  ;;  %v695_v15 = vld [vmem:[%s1056_s4] sm:$0xff]  ;;  %s293_s1 = scalar_lea.vmem [#allocation4], %s613_s13  ;;  %s504_s15 = sshll.u32 %s500_s14, 4  ;;  %s1008_s15 = int_to_ptr.hbm [resolvable:$true] %s504_s15 }
  0x1f   : > { %v304_v16 = vld [vmem:[%s301_s21] sm:$0xff]  ;;  %s502_s2 = sshll.u32 %s293_s1, 4  ;;  %s471_s9 = scalar_lea.sflag [#allocation3], %s990_s8  ;;  %s1006_s2 = int_to_ptr.vmem [resolvable:$true] %s502_s2 }
  0x20   : > { %v302_v17 = vld [vmem:[%s297_s29] sm:$0xff]  ;;  %v305_v18 = vpack.c.bf16 %v304_v16, %v304_v16  ;;  %s286_s29 = scalar_lea.vmem [#allocation2], %s613_s13  ;;  %s763_s16 = sshra.s32 %s491_s0, 4  ;;  %s764_s16 = int_to_ptr.hbm [resolvable:$true] %s763_s16 }
  0x21   : > { %v303_v19 = vpack.c.bf16 %v302_v17, %v302_v17  ;;  %v747_v20 = vld [vmem:[%s1055_s3] ss:$0 sm:$0xff]  ;;  %s488_s28 = sshll.u32 %s286_s29, 4  ;;  %s765_s17 = scalar_lea.hbm %s764_s16, 8  ;;  %s489_s28 = int_to_ptr.vmem [resolvable:$true] %s488_s28 }
  0x22   : > { %375 = vmatpush.bf16.xpose.msra.mxu0 %v693_v2  ;;  %v748_v21 = vld [vmem:[%s1057_s5] ss:$0 sm:$0xff]  ;;  %p766_p11 = scmp.ne.s32.totalorder %s764_s16, %s765_s17  ;;  %p770_p0 = scmp.lt.s32.totalorder %s764_s16, %s1058_s6 }
  0x23   : > { %457 = vmatpush.bf16.xpose.msra.mxu1 %v701_v3  ;;  %p771_p1 = scmp.lt.s32.totalorder %s769_s19, %s765_s17 }
  0x24   : > { %p767_p12 = pnand %p766_p11, %p923_p5 }
  0x25   : > { %p772_p2 = por %p771_p1, %p770_p0 }
  0x26   : > { %p768_p13 = pneg %p767_p12 }
  0x28   : > { %p773_p3 = pnand %p772_p2, %p768_p13 }
  0x2a   : > { %376 = vmatpush.bf16.xpose.msra.mxu0 %v692_v4 }
  0x2b   : > { %458 = vmatpush.bf16.xpose.msra.mxu1 %v700_v5 }
  0x32   : > { %377 = vmatpush.bf16.xpose.msra.mxu0 %v691_v6 }
  0x33   : > { %459 = vmatpush.bf16.xpose.msra.mxu1 %v699_v7 }
  0x3a   : > { %378 = vmatpush.bf16.xpose.msra.mxu0 %v690_v8 }
  0x3b   : > { %460 = vmatpush.bf16.xpose.msra.mxu1 %v698_v9 }
  0x42   : > { %379 = vmatpush.bf16.xpose.msra.mxu0 %v689_v10 }
  0x43   : > { %461 = vmatpush.bf16.xpose.msra.mxu1 %v697_v11 }
  0x4a   : > { %380 = vmatpush.bf16.xpose.msra.mxu0 %v688_v12 }
  0x4b   : > { %462 = vmatpush.bf16.xpose.msra.mxu1 %v696_v13 }
  0x52   : > { %381 = vmatpush.bf16.xpose.msra.mxu0 %v687_v14 }
  0x53   : > { %463 = vmatpush.bf16.xpose.msra.mxu1 %v695_v15 }
  0x59   : > { %382 = vmatmul.bf16.vlgmr.msra.gmra.mxu0 %v305_v18 }
  0x5a   : > { %464 = vmatmul.bf16.vlgmr.msra.gmra.mxu1 %v303_v19 }
  0xd6   : > { %v383_v22 = vpop.f32.mrf.mxu0 }
  0xd7   : > { %v465_v23 = vpop.f32.mrf.mxu1  ;;  %v384_v24 = vadd.f32 %v747_v20, %v383_v22 }
  0xd8   : > { %v466_v25 = vadd.f32 %v748_v21, %v465_v23 }
  0xd9   : > { %387 = vst [vmem:[%s286_s29] sm:$0xff] %v384_v24 }
  0xda   : > { %469 = vst [vmem:[%s293_s1] sm:$0xff] %v466_v25 }
  0xdb   : > { %776 = shalt.err (!%p773_p3)
}
  0xdc   : > { %703 = dma.vmem_to_hbm [thread:$0]  (%p923_p5), %s489_s28, 128, %s491_s0, %s471_s9  }
  0xdd   : > { %s476_s1 = scalar_lea.sflag [#allocation5], %s990_s8  ;;  %s791_s21 = sshra.s32 %s1008_s15, 4  ;;  %s792_s21 = int_to_ptr.hbm [resolvable:$true] %s791_s21 }
  0xde   : > { %s793_s22 = scalar_lea.hbm %s792_s21, 8  ;;  %s797_s16 = scalar_lea.hbm %s1059_s7, 16 }
  0xdf   : > { %p794_p4 = scmp.ne.s32.totalorder %s792_s21, %s793_s22  ;;  %p798_p9 = scmp.lt.s32.totalorder %s792_s21, %s1059_s7 }
  0xe0   : > { %p799_p10 = scmp.lt.s32.totalorder %s797_s16, %s793_s22 }
  0xe1   : > { %p795_p7 = pnand %p794_p4, %p923_p5 }
  0xe2   : > { %p800_p11 = por %p799_p10, %p798_p9 }
  0xe3   : > { %p796_p8 = pneg %p795_p7 }
  0xe5   : > { %p801_p12 = pnand %p800_p11, %p796_p8 }
  0xe7   : > { %804 = shalt.err (!%p801_p12)
}
  0xe8   : > { %704 = dma.vmem_to_hbm [thread:$0]  (%p923_p5), %s1006_s2, 128, %s1008_s15, %s476_s1   ;;  %v385_v26 = vpop.f32.mrf.mxu0  ;;  %v467_v27 = vpop.f32.mrf.mxu1 }
  0xe9 PF: > { %p714_p13 = scmp.ge.s32.totalorder %s843_s27, 2  ;;  %s516_s0 = sand.u32 1, %s831_s24  }
  0xea   : > { %s517_s8 = scalar_lea.sflag [#allocation3], %s516_s0 }
  0xeb   : > { %p708_p0 = pnand %p714_p13, %p927_p6 }
  0xed   : > { %p709_p1 = pneg %p708_p0 }
  0xef   : > { %822 = dma.done.wait (%p709_p1), %s517_s8, 128  }
  0xf0   : > { %824 = vsyncadd (%p709_p1), %s517_s8, 4294967168  ;;  %s527_s28 = scalar_lea.sflag [#allocation5], %s516_s0 }
  0xf1   : > { %826 = dma.done.wait (%p709_p1), %s527_s28, 128  }
  0xf2   : > { %828 = vsyncadd (%p709_p1), %s527_s28, 4294967168  ;;  %p21_p5 = scmp.ge.s32.totalorder %s910_s30, 4   ;;  %s1068_s24 = smov %s835_s25 }
  0xf3   : > { %s1069_s25 = smov %s839_s26  ;;  %s1070_s26 = smov %s921_s10 }
  0xf4   : > { %s1071_s27 = smov %s910_s30  ;;  %23 = sbr.rel (!%p21_p5) target bundleno = 9 (0x9), region = 99 }
  0xf9   :  { %533 = vsyncpa [#allocation3], 1 }
  0xfa   :  { %535 = vsyncpa [#allocation3 + $0x1], 1 }
  0xfb   :  { %536 = vsyncpa [#allocation5], 1 }
  0xfc   :  { %538 = vsyncpa [#allocation5 + $0x1], 1 }

</bundles_post_ra>
